<compile_context>
chip_gen: v5e
topology: v5e:2x2
jax: 0.10.0
libtpu: 0.0.40
codegen_flags: <defaults>
</compile_context>

<pallas_src>
import functools

import jax
import jax.numpy as jnp
from jax.experimental import pallas as pl
from jax.experimental.pallas import tpu as pltpu

_PACK = 8  # node rows packed per slab row (= f32 sublane count)


def _mlp_slab_kernel(x_ref, w12_ref, w2b_ref, b1_ref, b2_ref, sel_ref, o_ref,
                     *, ph):
    """Row-slab MLP body.

    x_ref:   [R, P*D_in]            slab of P=8 packed node rows (pipelined)
    w12_ref: [P*D_in, P*H + P*D_out] block-diag [W1^T | W2a]      (resident)
    w2b_ref: [P*H, P*D_out]          block-diag W2b               (resident)
    b1_ref:  [1, P*H], b2_ref: [1, P*D_out]   biases tiled P times (resident)
    sel_ref: [P*D_out, P*D_out]      0/1 per-node group selector   (resident)
    o_ref:   [R, P*D_out]            normalized output slab
    """
    xs = x_ref[...]                                               # [R, P*D_in]

    # Merged lin1 + (x @ W2a) against the block-diagonal weights.
    t = jnp.dot(xs, w12_ref[...], preferred_element_type=jnp.float32)
    h = jnp.maximum(t[:, :ph] + b1_ref[...], 0.0)                 # [R, P*H]
    y = (t[:, ph:]
         + jnp.dot(h, w2b_ref[...], preferred_element_type=jnp.float32)
         + b2_ref[...])                                           # [R, P*D_out]

    # Per-node L2 normalization.  Each node occupies a d_out-lane group inside
    # the slab row, so ||y||^2 is a segmented lane reduction.  Do it with a
    # 0/1 group-selector matmul so everything stays lane-dense (no cross-lane
    # reshapes).  The hi/lo split keeps the sum exact to ~1e-6 even if the MXU
    # evaluates f32 matmuls with truncated bf16 passes (0/1 weights are exact).
    y2 = y * y
    y2_hi = y2.astype(jnp.bfloat16).astype(jnp.float32)
    y2_lo = y2 - y2_hi
    sel = sel_ref[...]
    sq = (jnp.dot(y2_hi, sel, preferred_element_type=jnp.float32)
          + jnp.dot(y2_lo, sel, preferred_element_type=jnp.float32))

    # F.normalize(eps=1e-12): y / max(||y||, 1e-12) == y * rsqrt(max(||y||^2, 1e-24)).
    o_ref[...] = y * jax.lax.rsqrt(jnp.maximum(sq, 1e-24))


def _round_up(x, m):
    return ((x + m - 1) // m) * m


def _choose_slab_tile(n_slab_rows, slab_in_w, slab_out_w, hidden, d_out):
    """Pick the slab-row tile size.

    Budget ~12 MiB of VMEM for the double-buffered x/out tiles plus the
    kernel's live intermediates — comfortably under the ~32 MiB default scoped
    VMEM limit on v5e/v6e/v7x.  Prefer >=2 grid steps so the "parallel" row
    axis can be split across v7x's two TensorCores.
    """
    p = _PACK
    bytes_per_slab_row = 4 * (
        2 * slab_in_w            # x tile, double buffered
        + 2 * slab_out_w         # out tile, double buffered
        + p * (hidden + d_out)   # t
        + p * hidden             # h
        + 3 * p * d_out          # y, y*y, hi/lo (largely reused)
    )
    cap = max(8, min(2048, (12 * 1024 * 1024 // bytes_per_slab_row) // 8 * 8))
    if n_slab_rows <= 8:
        return n_slab_rows                       # single full-size block
    two_step = _round_up(-(-n_slab_rows // 2), 8)
    return min(cap, two_step)


def _mlp_one_graph(x, w12_blk, w2b_blk, b1_slab, b2_slab, sel, *, hidden, d_out):
    n, d_in = x.shape
    p = _PACK
    n8 = _round_up(max(n, 1), p)
    if n8 != n:
        # Only materializes a copy when n is not a multiple of 8.
        x = jnp.pad(x, ((0, n8 - n), (0, 0)))
    s = n8 // p
    slab_in_w = p * d_in
    slab_out_w = p * d_out
    x_slab = x.reshape(s, slab_in_w)             # free: contiguous row-major view

    ts = _choose_slab_tile(s, slab_in_w, slab_out_w, hidden, d_out)
    grid = (pl.cdiv(s, ts),)

    flops = 2 * n8 * (d_in * hidden + (d_in + hidden) * d_out) + 6 * n8 * d_out
    bytes_accessed = 4 * (x_slab.size + s * slab_out_w + w12_blk.size
                          + w2b_blk.size + b1_slab.size + b2_slab.size + sel.size)

    kernel = functools.partial(_mlp_slab_kernel, ph=p * hidden)
    out_slab = pl.pallas_call(
        kernel,
        out_shape=jax.ShapeDtypeStruct((s, slab_out_w), jnp.float32),
        grid=grid,
        in_specs=[
            pl.BlockSpec((ts, slab_in_w), lambda i: (i, 0)),   # x slab (pipelined)
            pl.BlockSpec(w12_blk.shape, lambda i: (0, 0)),     # resident weights
            pl.BlockSpec(w2b_blk.shape, lambda i: (0, 0)),
            pl.BlockSpec(b1_slab.shape, lambda i: (0, 0)),
            pl.BlockSpec(b2_slab.shape, lambda i: (0, 0)),
            pl.BlockSpec(sel.shape, lambda i: (0, 0)),
        ],
        out_specs=pl.BlockSpec((ts, slab_out_w), lambda i: (i, 0)),
        compiler_params=pltpu.CompilerParams(
            dimension_semantics=("parallel",)),
        cost_estimate=pl.CostEstimate(
            flops=flops, transcendentals=n8, bytes_accessed=bytes_accessed),
    )(x_slab, w12_blk, w2b_blk, b1_slab, b2_slab, sel)

    out = out_slab.reshape(n8, d_out)            # free: contiguous row-major view
    return out if n8 == n else out[:n]


@jax.jit
def mlp_forward(x1, x2, w1, b1, w2, b2):
    """Mirrors MLP.forward(G1_data, G2_data) -> (pos_emd1, pos_emd2).

    x1: [N1, D_in], x2: [N2, D_in]
    w1: [H, D_in], b1: [H], w2: [D_out, D_in + H], b2: [D_out]
    """
    d_in = x1.shape[1]
    hidden = w1.shape[0]
    d_out = w2.shape[0]
    p = _PACK

    # One-time weight prep (tiny; fused by XLA under jit).
    w1_t = w1.T                      # [D_in, H]
    w2a = w2[:, :d_in].T             # [D_in, D_out]
    w2b = w2[:, d_in:].T             # [H, D_out]

    # Block-diagonal expansion so a P=8-row slab [x_0 | ... | x_7] goes through
    # each layer with one lane-dense matmul.  Only sensible for small feature
    # dims (the expansion costs P^2 = 64x the weight bytes).
    # TODO(synk): fall back to a per-row (un-packed) kernel if feature dims grow.
    eye = jnp.eye(p, dtype=jnp.float32)
    w1_blk = jnp.kron(eye, w1_t)                       # [P*D_in, P*H]
    w2a_blk = jnp.kron(eye, w2a)                       # [P*D_in, P*D_out]
    w2b_blk = jnp.kron(eye, w2b)                       # [P*H,    P*D_out]
    # Merge lin1 with the x @ W2a partial of lin2: x_slab @ [W1_blk | W2a_blk].
    w12_blk = jnp.concatenate([w1_blk, w2a_blk], axis=1)
    b1_slab = jnp.tile(b1, p).reshape(1, p * hidden)
    b2_slab = jnp.tile(b2, p).reshape(1, p * d_out)

    # 0/1 selector: sel[i, j] = 1 iff lanes i and j belong to the same node
    # (same d_out-wide group) -> (y*y) @ sel broadcasts each node's ||y||^2
    # over its own lanes.
    gid = jnp.arange(p * d_out) // d_out
    sel = (gid[:, None] == gid[None, :]).astype(jnp.float32)

    run = functools.partial(_mlp_one_graph, w12_blk=w12_blk, w2b_blk=w2b_blk,
                            b1_slab=b1_slab, b2_slab=b2_slab, sel=sel,
                            hidden=hidden, d_out=d_out)
    return run(x1), run(x2)


def _reference(x, w1, b1, w2, b2):
    h = jnp.maximum(x @ w1.T + b1, 0.0)
    y = jnp.concatenate([x, h], axis=1) @ w2.T + b2
    norm = jnp.sqrt(jnp.sum(y * y, axis=1, keepdims=True))
    return y / jnp.maximum(norm, 1e-12)


if __name__ == "__main__":
    # Small shapes consistent with the module: input_dim=16, hidden_dim=32,
    # output_dim=16.  N1 exercises a multi-step grid with a partial last tile;
    # N2 exercises the n % 8 != 0 row-padding path.
    N1, N2 = 200, 37
    input_dim, hidden_dim, output_dim = 16, 32, 16

    key = jax.random.PRNGKey(0)
    k1, k2, kw1, kb1, kw2, kb2 = jax.random.split(key, 6)

    x1 = jax.random.normal(k1, (N1, input_dim), dtype=jnp.float32)
    x2 = jax.random.normal(k2, (N2, input_dim), dtype=jnp.float32)

    # Deterministic parameter init (uniform, like torch.nn.Linear's default range).
    bound1 = 1.0 / (input_dim ** 0.5)
    w1 = jax.random.uniform(kw1, (hidden_dim, input_dim), jnp.float32, -bound1, bound1)
    b1 = jax.random.uniform(kb1, (hidden_dim,), jnp.float32, -bound1, bound1)
    bound2 = 1.0 / ((input_dim + hidden_dim) ** 0.5)
    w2 = jax.random.uniform(kw2, (output_dim, input_dim + hidden_dim), jnp.float32,
                            -bound2, bound2)
    b2 = jax.random.uniform(kb2, (output_dim,), jnp.float32, -bound2, bound2)

    out1, out2 = mlp_forward(x1, x2, w1, b1, w2, b2)
    out1 = jax.block_until_ready(out1)
    out2 = jax.block_until_ready(out2)

    # Verify against a pure-JAX reference of the PyTorch semantics.
    ref1 = _reference(x1, w1, b1, w2, b2)
    ref2 = _reference(x2, w1, b1, w2, b2)
    assert out1.shape == (N1, output_dim) and out2.shape == (N2, output_dim)
    assert jnp.allclose(out1, ref1, atol=1e-5), "mismatch on graph 1"
    assert jnp.allclose(out2, ref2, atol=1e-5), "mismatch on graph 2"

    print("KERNEL_OK")
</pallas_src>

<mosaic_0001>
module attributes {stable_mosaic.version = 11 : i64} {
  func.func @_mlp_slab_kernel(%arg0: i32, %arg1: memref<16x128xf32, #tpu.memory_space<vmem>>, %arg2: memref<128x384xf32, #tpu.memory_space<vmem>>, %arg3: memref<256x128xf32, #tpu.memory_space<vmem>>, %arg4: memref<1x256xf32, #tpu.memory_space<vmem>>, %arg5: memref<1x128xf32, #tpu.memory_space<vmem>>, %arg6: memref<128x128xf32, #tpu.memory_space<vmem>>, %arg7: memref<16x128xf32, #tpu.memory_space<vmem>>) attributes {dimension_semantics = [#tpu.dimension_semantics<parallel>], iteration_bounds = array<i64: 2>, scalar_prefetch = 0 : i64, scratch_operands = 0 : i64, tpu.core_type = #tpu.core_type<tc>, window_params = [{transform_indices = @transform_0, window_bounds = array<i64: 16, 128>}, {pipeline_mode = #tpu.pipeline_mode<synchronous>, transform_indices = @transform_1, window_bounds = array<i64: 128, 384>}, {pipeline_mode = #tpu.pipeline_mode<synchronous>, transform_indices = @transform_2, window_bounds = array<i64: 256, 128>}, {pipeline_mode = #tpu.pipeline_mode<synchronous>, transform_indices = @transform_3, window_bounds = array<i64: 1, 256>}, {pipeline_mode = #tpu.pipeline_mode<synchronous>, transform_indices = @transform_4, window_bounds = array<i64: 1, 128>}, {pipeline_mode = #tpu.pipeline_mode<synchronous>, transform_indices = @transform_5, window_bounds = array<i64: 128, 128>}, {transform_indices = @transform_6, window_bounds = array<i64: 16, 128>}]} {
    %c0 = arith.constant 0 : index
    %c0_0 = arith.constant 0 : index
    %0 = vector.load %arg1[%c0, %c0_0] : memref<16x128xf32, #tpu.memory_space<vmem>>, vector<16x128xf32>
    %c0_1 = arith.constant 0 : index
    %c0_2 = arith.constant 0 : index
    %1 = vector.load %arg2[%c0_1, %c0_2] : memref<128x384xf32, #tpu.memory_space<vmem>>, vector<128x384xf32>
    %cst = arith.constant dense<0.000000e+00> : vector<16x384xf32>
    %2 = tpu.matmul %0, %1, %cst {dimension_numbers = #tpu.dot_dimension_numbers<[1], [0], [0], [1], [0, 0, 1, 1], [], []>} : vector<16x128xf32>, vector<128x384xf32>, vector<16x384xf32> -> vector<16x384xf32>
    %3 = vector.extract_strided_slice %2 {offsets = [0, 0], sizes = [16, 256], strides = [1, 1]} : vector<16x384xf32> to vector<16x256xf32>
    %c0_3 = arith.constant 0 : index
    %c0_4 = arith.constant 0 : index
    %4 = vector.load %arg4[%c0_3, %c0_4] : memref<1x256xf32, #tpu.memory_space<vmem>>, vector<1x256xf32>
    %5 = vector.broadcast %4 : vector<1x256xf32> to vector<16x256xf32>
    %6 = arith.addf %3, %5 : vector<16x256xf32>
    %cst_5 = arith.constant 0.000000e+00 : f32
    %7 = vector.broadcast %cst_5 : f32 to vector<16x256xf32>
    %8 = arith.maximumf %6, %7 : vector<16x256xf32>
    %9 = vector.extract_strided_slice %2 {offsets = [0, 256], sizes = [16, 128], strides = [1, 1]} : vector<16x384xf32> to vector<16x128xf32>
    %c0_6 = arith.constant 0 : index
    %c0_7 = arith.constant 0 : index
    %10 = vector.load %arg3[%c0_6, %c0_7] : memref<256x128xf32, #tpu.memory_space<vmem>>, vector<256x128xf32>
    %cst_8 = arith.constant dense<0.000000e+00> : vector<16x128xf32>
    %11 = tpu.matmul %8, %10, %cst_8 {dimension_numbers = #tpu.dot_dimension_numbers<[1], [0], [0], [1], [0, 0, 1, 1], [], []>} : vector<16x256xf32>, vector<256x128xf32>, vector<16x128xf32> -> vector<16x128xf32>
    %12 = arith.addf %9, %11 : vector<16x128xf32>
    %c0_9 = arith.constant 0 : index
    %c0_10 = arith.constant 0 : index
    %13 = vector.load %arg5[%c0_9, %c0_10] : memref<1x128xf32, #tpu.memory_space<vmem>>, vector<1x128xf32>
    %14 = vector.broadcast %13 : vector<1x128xf32> to vector<16x128xf32>
    %15 = arith.addf %12, %14 : vector<16x128xf32>
    %16 = arith.mulf %15, %15 : vector<16x128xf32>
    %17 = arith.truncf %16 : vector<16x128xf32> to vector<16x128xbf16>
    %18 = arith.extf %17 : vector<16x128xbf16> to vector<16x128xf32>
    %19 = arith.subf %16, %18 : vector<16x128xf32>
    %c0_11 = arith.constant 0 : index
    %c0_12 = arith.constant 0 : index
    %20 = vector.load %arg6[%c0_11, %c0_12] : memref<128x128xf32, #tpu.memory_space<vmem>>, vector<128x128xf32>
    %cst_13 = arith.constant dense<0.000000e+00> : vector<16x128xf32>
    %21 = tpu.matmul %18, %20, %cst_13 {dimension_numbers = #tpu.dot_dimension_numbers<[1], [0], [0], [1], [0, 0, 1, 1], [], []>} : vector<16x128xf32>, vector<128x128xf32>, vector<16x128xf32> -> vector<16x128xf32>
    %cst_14 = arith.constant dense<0.000000e+00> : vector<16x128xf32>
    %22 = tpu.matmul %19, %20, %cst_14 {dimension_numbers = #tpu.dot_dimension_numbers<[1], [0], [0], [1], [0, 0, 1, 1], [], []>} : vector<16x128xf32>, vector<128x128xf32>, vector<16x128xf32> -> vector<16x128xf32>
    %23 = arith.addf %21, %22 : vector<16x128xf32>
    %cst_15 = arith.constant 1.000000e-24 : f32
    %24 = vector.broadcast %cst_15 : f32 to vector<16x128xf32>
    %25 = arith.maximumf %23, %24 : vector<16x128xf32>
    %26 = math.rsqrt %25 : vector<16x128xf32>
    %27 = arith.mulf %15, %26 : vector<16x128xf32>
    %c0_16 = arith.constant 0 : index
    %c0_17 = arith.constant 0 : index
    %28 = vector.load %arg7[%c0_16, %c0_17] : memref<16x128xf32, #tpu.memory_space<vmem>>, vector<16x128xf32>
    tpu.vector_store %arg7[%c0_16, %c0_17], %27 {strides = array<i32>} : memref<16x128xf32, #tpu.memory_space<vmem>>, vector<16x128xf32>,
    return
  }
  func.func @transform_0(%arg0: i32) -> (i32, i32) {
    %c0_i32 = arith.constant 0 : i32
    %c0_i32_0 = arith.constant 0 : i32
    return %arg0, %c0_i32 : i32, i32
  }
  func.func @transform_1(%arg0: i32) -> (i32, i32) {
    %c0_i32 = arith.constant 0 : i32
    %c0_i32_0 = arith.constant 0 : i32
    %c0_i32_1 = arith.constant 0 : i32
    return %c0_i32, %c0_i32_0 : i32, i32
  }
  func.func @transform_2(%arg0: i32) -> (i32, i32) {
    %c0_i32 = arith.constant 0 : i32
    %c0_i32_0 = arith.constant 0 : i32
    %c0_i32_1 = arith.constant 0 : i32
    return %c0_i32, %c0_i32_0 : i32, i32
  }
  func.func @transform_3(%arg0: i32) -> (i32, i32) {
    %c0_i32 = arith.constant 0 : i32
    %c0_i32_0 = arith.constant 0 : i32
    %c0_i32_1 = arith.constant 0 : i32
    return %c0_i32, %c0_i32_0 : i32, i32
  }
  func.func @transform_4(%arg0: i32) -> (i32, i32) {
    %c0_i32 = arith.constant 0 : i32
    %c0_i32_0 = arith.constant 0 : i32
    %c0_i32_1 = arith.constant 0 : i32
    return %c0_i32, %c0_i32_0 : i32, i32
  }
  func.func @transform_5(%arg0: i32) -> (i32, i32) {
    %c0_i32 = arith.constant 0 : i32
    %c0_i32_0 = arith.constant 0 : i32
    %c0_i32_1 = arith.constant 0 : i32
    return %c0_i32, %c0_i32_0 : i32, i32
  }
  func.func @transform_6(%arg0: i32) -> (i32, i32) {
    %c0_i32 = arith.constant 0 : i32
    %c0_i32_0 = arith.constant 0 : i32
    return %arg0, %c0_i32 : i32, i32
  }
}

module attributes {stable_mosaic.version = 11 : i64} {
  func.func @_mlp_slab_kernel(%arg0: i32, %arg1: memref<5x128xf32, #tpu.memory_space<vmem>>, %arg2: memref<128x384xf32, #tpu.memory_space<vmem>>, %arg3: memref<256x128xf32, #tpu.memory_space<vmem>>, %arg4: memref<1x256xf32, #tpu.memory_space<vmem>>, %arg5: memref<1x128xf32, #tpu.memory_space<vmem>>, %arg6: memref<128x128xf32, #tpu.memory_space<vmem>>, %arg7: memref<5x128xf32, #tpu.memory_space<vmem>>) attributes {dimension_semantics = [#tpu.dimension_semantics<parallel>], iteration_bounds = array<i64: 1>, scalar_prefetch = 0 : i64, scratch_operands = 0 : i64, tpu.core_type = #tpu.core_type<tc>, window_params = [{transform_indices = @transform_0, window_bounds = array<i64: 5, 128>}, {pipeline_mode = #tpu.pipeline_mode<synchronous>, transform_indices = @transform_1, window_bounds = array<i64: 128, 384>}, {pipeline_mode = #tpu.pipeline_mode<synchronous>, transform_indices = @transform_2, window_bounds = array<i64: 256, 128>}, {pipeline_mode = #tpu.pipeline_mode<synchronous>, transform_indices = @transform_3, window_bounds = array<i64: 1, 256>}, {pipeline_mode = #tpu.pipeline_mode<synchronous>, transform_indices = @transform_4, window_bounds = array<i64: 1, 128>}, {pipeline_mode = #tpu.pipeline_mode<synchronous>, transform_indices = @transform_5, window_bounds = array<i64: 128, 128>}, {transform_indices = @transform_6, window_bounds = array<i64: 5, 128>}]} {
    %c0 = arith.constant 0 : index
    %c0_0 = arith.constant 0 : index
    %0 = vector.load %arg1[%c0, %c0_0] : memref<5x128xf32, #tpu.memory_space<vmem>>, vector<5x128xf32>
    %c0_1 = arith.constant 0 : index
    %c0_2 = arith.constant 0 : index
    %1 = vector.load %arg2[%c0_1, %c0_2] : memref<128x384xf32, #tpu.memory_space<vmem>>, vector<128x384xf32>
    %cst = arith.constant dense<0.000000e+00> : vector<5x384xf32>
    %2 = tpu.matmul %0, %1, %cst {dimension_numbers = #tpu.dot_dimension_numbers<[1], [0], [0], [1], [0, 0, 1, 1], [], []>} : vector<5x128xf32>, vector<128x384xf32>, vector<5x384xf32> -> vector<5x384xf32>
    %3 = vector.extract_strided_slice %2 {offsets = [0, 0], sizes = [5, 256], strides = [1, 1]} : vector<5x384xf32> to vector<5x256xf32>
    %c0_3 = arith.constant 0 : index
    %c0_4 = arith.constant 0 : index
    %4 = vector.load %arg4[%c0_3, %c0_4] : memref<1x256xf32, #tpu.memory_space<vmem>>, vector<1x256xf32>
    %5 = vector.broadcast %4 : vector<1x256xf32> to vector<5x256xf32>
    %6 = arith.addf %3, %5 : vector<5x256xf32>
    %cst_5 = arith.constant 0.000000e+00 : f32
    %7 = vector.broadcast %cst_5 : f32 to vector<5x256xf32>
    %8 = arith.maximumf %6, %7 : vector<5x256xf32>
    %9 = vector.extract_strided_slice %2 {offsets = [0, 256], sizes = [5, 128], strides = [1, 1]} : vector<5x384xf32> to vector<5x128xf32>
    %c0_6 = arith.constant 0 : index
    %c0_7 = arith.constant 0 : index
    %10 = vector.load %arg3[%c0_6, %c0_7] : memref<256x128xf32, #tpu.memory_space<vmem>>, vector<256x128xf32>
    %cst_8 = arith.constant dense<0.000000e+00> : vector<5x128xf32>
    %11 = tpu.matmul %8, %10, %cst_8 {dimension_numbers = #tpu.dot_dimension_numbers<[1], [0], [0], [1], [0, 0, 1, 1], [], []>} : vector<5x256xf32>, vector<256x128xf32>, vector<5x128xf32> -> vector<5x128xf32>
    %12 = arith.addf %9, %11 : vector<5x128xf32>
    %c0_9 = arith.constant 0 : index
    %c0_10 = arith.constant 0 : index
    %13 = vector.load %arg5[%c0_9, %c0_10] : memref<1x128xf32, #tpu.memory_space<vmem>>, vector<1x128xf32>
    %14 = vector.broadcast %13 : vector<1x128xf32> to vector<5x128xf32>
    %15 = arith.addf %12, %14 : vector<5x128xf32>
    %16 = arith.mulf %15, %15 : vector<5x128xf32>
    %17 = arith.truncf %16 : vector<5x128xf32> to vector<5x128xbf16>
    %18 = arith.extf %17 : vector<5x128xbf16> to vector<5x128xf32>
    %19 = arith.subf %16, %18 : vector<5x128xf32>
    %c0_11 = arith.constant 0 : index
    %c0_12 = arith.constant 0 : index
    %20 = vector.load %arg6[%c0_11, %c0_12] : memref<128x128xf32, #tpu.memory_space<vmem>>, vector<128x128xf32>
    %cst_13 = arith.constant dense<0.000000e+00> : vector<5x128xf32>
    %21 = tpu.matmul %18, %20, %cst_13 {dimension_numbers = #tpu.dot_dimension_numbers<[1], [0], [0], [1], [0, 0, 1, 1], [], []>} : vector<5x128xf32>, vector<128x128xf32>, vector<5x128xf32> -> vector<5x128xf32>
    %cst_14 = arith.constant dense<0.000000e+00> : vector<5x128xf32>
    %22 = tpu.matmul %19, %20, %cst_14 {dimension_numbers = #tpu.dot_dimension_numbers<[1], [0], [0], [1], [0, 0, 1, 1], [], []>} : vector<5x128xf32>, vector<128x128xf32>, vector<5x128xf32> -> vector<5x128xf32>
    %23 = arith.addf %21, %22 : vector<5x128xf32>
    %cst_15 = arith.constant 1.000000e-24 : f32
    %24 = vector.broadcast %cst_15 : f32 to vector<5x128xf32>
    %25 = arith.maximumf %23, %24 : vector<5x128xf32>
    %26 = math.rsqrt %25 : vector<5x128xf32>
    %27 = arith.mulf %15, %26 : vector<5x128xf32>
    %c0_16 = arith.constant 0 : index
    %c0_17 = arith.constant 0 : index
    %28 = vector.load %arg7[%c0_16, %c0_17] : memref<5x128xf32, #tpu.memory_space<vmem>>, vector<5x128xf32>
    tpu.vector_store %arg7[%c0_16, %c0_17], %27 {strides = array<i32>} : memref<5x128xf32, #tpu.memory_space<vmem>>, vector<5x128xf32>,
    return
  }
  func.func @transform_0(%arg0: i32) -> (i32, i32) {
    %c0_i32 = arith.constant 0 : i32
    %c0_i32_0 = arith.constant 0 : i32
    return %arg0, %c0_i32 : i32, i32
  }
  func.func @transform_1(%arg0: i32) -> (i32, i32) {
    %c0_i32 = arith.constant 0 : i32
    %c0_i32_0 = arith.constant 0 : i32
    %c0_i32_1 = arith.constant 0 : i32
    return %c0_i32, %c0_i32_0 : i32, i32
  }
  func.func @transform_2(%arg0: i32) -> (i32, i32) {
    %c0_i32 = arith.constant 0 : i32
    %c0_i32_0 = arith.constant 0 : i32
    %c0_i32_1 = arith.constant 0 : i32
    return %c0_i32, %c0_i32_0 : i32, i32
  }
  func.func @transform_3(%arg0: i32) -> (i32, i32) {
    %c0_i32 = arith.constant 0 : i32
    %c0_i32_0 = arith.constant 0 : i32
    %c0_i32_1 = arith.constant 0 : i32
    return %c0_i32, %c0_i32_0 : i32, i32
  }
  func.func @transform_4(%arg0: i32) -> (i32, i32) {
    %c0_i32 = arith.constant 0 : i32
    %c0_i32_0 = arith.constant 0 : i32
    %c0_i32_1 = arith.constant 0 : i32
    return %c0_i32, %c0_i32_0 : i32, i32
  }
  func.func @transform_5(%arg0: i32) -> (i32, i32) {
    %c0_i32 = arith.constant 0 : i32
    %c0_i32_0 = arith.constant 0 : i32
    %c0_i32_1 = arith.constant 0 : i32
    return %c0_i32, %c0_i32_0 : i32, i32
  }
  func.func @transform_6(%arg0: i32) -> (i32, i32) {
    %c0_i32 = arith.constant 0 : i32
    %c0_i32_0 = arith.constant 0 : i32
    return %arg0, %c0_i32 : i32, i32
  }
}

</mosaic_0001>

<bundles_post_ra>
// kernel: tile.13
= control target key start
LH: loop header
LB: loop body
LE: loop exit
PB: predicated region body
PF: predicated region fallthrough
CT: control target
= control target key end

     0   :  { %s22_s0 = inlined_call_operand.vmem [shape: f32[32], index: 0, kind: input, shape index: {}]   ;;  %s23_s1 = inlined_call_operand.vmem [shape: f32[8,32], index: 1, kind: output, shape index: {}]  }
   0x1   :  { %v4_v0 = vld [vmem:[%s22_s0] ss:$0 sm:$0xff] }
   0x2   :  { %5 = vst [vmem:[%s23_s1] sm:$0xff] %v4_v0 }

// kernel: tile.14
= control target key start
LH: loop header
LB: loop body
LE: loop exit
PB: predicated region body
PF: predicated region fallthrough
CT: control target
= control target key end

     0   :  { %s7_s6 = smov 3  ;;  %s46_s9 = smov 96   ;;  %vm4_vm0 = vcmask 261120   ;;  %vm11_vm1 = vcmask 1048320   ;;  %vm18_vm2 = vcmask 785920   ;;  %vm25_vm3 = vcmask 523520   ;;  %s77_s0 = inlined_call_operand.vmem [shape: f32[8,32], index: 0, kind: input, shape index: {}]   ;;  %s78_s1 = inlined_call_operand.vmem [shape: f32[1,256], index: 1, kind: output, shape index: {}]  }
   0x1   :  { %v39_v0 = vld [vmem:[%s77_s0 + $0x3] ss:$4 sm:%s7_s6]   ;;  %s21_s10 = smov 3  ;;  %s14_s13 = smov 3 }
   0x2   :  { %9 = vrot.lane.b32.xlu0 %v39_v0, %s46_s9  ;;  %v41_v1 = vld [vmem:[%s77_s0 + $0x1] ss:$4 sm:%s21_s10]   ;;  %s47_s14 = smov 32   ;;  %s48_s17 = smov 64  }
   0x3   :  { %23 = vrot.lane.b32.xlu1 %v41_v1, %s47_s14  ;;  %v40_v2 = vld [vmem:[%s77_s0 + $0x2] ss:$4 sm:%s14_s13]   ;;  %s2_s18 = smov 3 }
   0x4   :  { %v3_v3 = vld [vmem:[%s77_s0] ss:$4 sm:%s2_s18]  }
   0x5   :  { %5 = vst.msk [vmem:[#allocation0] ss:$8 sm:$0x3] %vm4_vm0, %v3_v3  }
   0xa   :  { %16 = vrot.lane.b32.xlu0 %v40_v2, %s48_s17 }
  0x74   :  { %v10_v4 = vpop.permute.xlu0 %9  }
  0x75   :  { %12 = vst.msk [vmem:[#allocation0] ss:$8 sm:$0x3] %vm11_vm1, %v10_v4   ;;  %v24_v5 = vpop.permute.xlu1 %23  }
  0x7c   :  { %v17_v6 = vpop.permute.xlu0 %16  }
  0x7d   :  { %19 = vst.msk [vmem:[#allocation0] ss:$8 sm:$0x3] %vm18_vm2, %v17_v6  }
  0x7e   :  { %26 = vst.msk [vmem:[#allocation0] ss:$8 sm:$0x3] %vm25_vm3, %v24_v5  }
  0x85   :  { %v29_v7 = vld [vmem:[#allocation0] sm:$0x1]  ;;  %v34_v8 = vld [vmem:[#allocation0 + $0x8] sm:$0x1] }
  0x86   :  { %32 = vst [vmem:[%s78_s1] sm:$0x1] %v29_v7 }
  0x87   :  { %42 = vst [vmem:[%s78_s1 + $0x1] sm:$0x1] %v34_v8 }

// kernel: tile.18
= control target key start
LH: loop header
LB: loop body
LE: loop exit
PB: predicated region body
PF: predicated region fallthrough
CT: control target
= control target key end

     0   :  { %s22_s0 = inlined_call_operand.vmem [shape: f32[16], index: 0, kind: input, shape index: {}]   ;;  %s23_s1 = inlined_call_operand.vmem [shape: f32[8,16], index: 1, kind: output, shape index: {}]  }
   0x1   :  { %v4_v0 = vld [vmem:[%s22_s0] ss:$0 sm:$0xff] }
   0x2   :  { %5 = vst [vmem:[%s23_s1] sm:$0xff] %v4_v0 }

// kernel: tile.19
= control target key start
LH: loop header
LB: loop body
LE: loop exit
PB: predicated region body
PF: predicated region fallthrough
CT: control target
= control target key end

     0   :  { %s67_s10 = smov 112   ;;  %s68_s11 = smov 80   ;;  %vm3_vm0 = vcmask 130048   ;;  %vm9_vm1 = vcmask 1048448   ;;  %vm15_vm2 = vcmask 917248   ;;  %vm21_vm3 = vcmask 786048   ;;  %s111_s0 = inlined_call_operand.vmem [shape: f32[8,16], index: 0, kind: input, shape index: {}]   ;;  %s112_s1 = inlined_call_operand.vmem [shape: f32[1,128], index: 1, kind: output, shape index: {}]  }
   0x1   :  { %v53_v0 = vld [vmem:[%s111_s0 + $0x7] sm:$0x1]   ;;  %v55_v1 = vld [vmem:[%s111_s0 + $0x5] sm:$0x1]   ;;  %v57_v2 = vld [vmem:[%s111_s0 + $0x3] sm:$0x1]  }
   0x2   :  { %7 = vrot.lane.b32.xlu0 %v53_v0, %s67_s10  ;;  %19 = vrot.lane.b32.xlu1 %v55_v1, %s68_s11  ;;  %s69_s14 = smov 48   ;;  %v54_v3 = vld [vmem:[%s111_s0 + $0x6] sm:$0x1]   ;;  %v56_v4 = vld [vmem:[%s111_s0 + $0x4] sm:$0x1]   ;;  %s70_s21 = smov 96  }
   0x3   :  { %31 = vrot.lane.b32.xlu2 %v57_v2, %s69_s14  ;;  %v58_v5 = vld [vmem:[%s111_s0 + $0x2] sm:$0x1]   ;;  %s71_s22 = smov 64   ;;  %s72_s23 = smov 32   ;;  %v59_v6 = vld [vmem:[%s111_s0 + $0x1] sm:$0x1]  }
   0x4   :  { %s73_s26 = smov 16   ;;  %v2_v7 = vld [vmem:[%s111_s0] sm:$0x1]   ;;  %vm27_vm4 = vcmask 654848   ;;  %vm33_vm5 = vcmask 523648   ;;  %vm39_vm6 = vcmask 392448  }
   0x5   :  { %4 = vst.msk [vmem:[#allocation0] sm:$0x1] %vm3_vm0, %v2_v7   ;;  %vm45_vm7 = vcmask 261248  }
   0xa   :  { %13 = vrot.lane.b32.xlu0 %v54_v3, %s70_s21  ;;  %25 = vrot.lane.b32.xlu1 %v56_v4, %s71_s22 }
   0xb   :  { %37 = vrot.lane.b32.xlu2 %v58_v5, %s72_s23 }
  0x12   :  { %43 = vrot.lane.b32.xlu0 %v59_v6, %s73_s26 }
  0x5d   :  { %v32_v8 = vpop.permute.xlu2 %31  }
  0x65   :  { %v38_v9 = vpop.permute.xlu2 %37  }
  0x74   :  { %v8_v10 = vpop.permute.xlu0 %7   ;;  %v20_v11 = vpop.permute.xlu1 %19  }
  0x75   :  { %10 = vst.msk [vmem:[#allocation0] sm:$0x1] %vm9_vm1, %v8_v10  }
  0x7c   :  { %v14_v12 = vpop.permute.xlu0 %13   ;;  %v26_v13 = vpop.permute.xlu1 %25  }
  0x7d   :  { %16 = vst.msk [vmem:[#allocation0] sm:$0x1] %vm15_vm2, %v14_v12  }
  0x7e   :  { %22 = vst.msk [vmem:[#allocation0] sm:$0x1] %vm21_vm3, %v20_v11  }
  0x7f   :  { %28 = vst.msk [vmem:[#allocation0] sm:$0x1] %vm27_vm4, %v26_v13  }
  0x80   :  { %34 = vst.msk [vmem:[#allocation0] sm:$0x1] %vm33_vm5, %v32_v8  }
  0x81   :  { %40 = vst.msk [vmem:[#allocation0] sm:$0x1] %vm39_vm6, %v38_v9  }
  0x84   :  { %v44_v14 = vpop.permute.xlu0 %43  }
  0x85   :  { %46 = vst.msk [vmem:[#allocation0] sm:$0x1] %vm45_vm7, %v44_v14  }
  0x8c   :  { %v49_v15 = vld [vmem:[#allocation0] sm:$0x1] }
  0x8d   :  { %52 = vst [vmem:[%s112_s1] sm:$0x1] %v49_v15 }

// kernel: mlp_forward.2
= control target key start
LH: loop header
LB: loop body
LE: loop exit
PB: predicated region body
PF: predicated region fallthrough
CT: control target
= control target key end

     0   :  { %s709_s21 = smov 0   ;;  %s1039_s0 = inlined_call_operand.vmem [shape: f32[25,128], index: 0, kind: input, shape index: {}]   ;;  %s1040_s1 = inlined_call_operand.vmem [shape: f32[128,384], index: 1, kind: input, shape index: {}]   ;;  %s1041_s2 = inlined_call_operand.vmem [shape: f32[256,128], index: 2, kind: input, shape index: {}]   ;;  %s1042_s3 = inlined_call_operand.vmem [shape: f32[1,256], index: 3, kind: input, shape index: {}]   ;;  %s1043_s4 = inlined_call_operand.vmem [shape: f32[1,128], index: 4, kind: input, shape index: {}]   ;;  %s1044_s5 = inlined_call_operand.vmem [shape: f32[128,128], index: 5, kind: input, shape index: {}]   ;;  %s1045_s6 = inlined_call_operand.vmem [shape: f32[25,128], index: 6, kind: output, shape index: {}]  }
   0x1 LB: > { %s626_s22 = sadd.s32 4294967295, %s672_s21   ;;  %p630_p0 = scmp.ge.s32.totalorder %s672_s21, 1  ;;  %s672_s21 = sphi %s709_s21, %s16_s21  }
   0x2   : > { %p213_p1 = scmp.lt.s32.totalorder %s672_s21, 3 }
   0x4   : > { %p214_p2 = pnand %p630_p0, %p213_p1 }
   0x5   : > { %s631_s11 = sshll.u32 (!%p214_p2), %s626_s22, 1 }
   0x6   : > { %217 = sbr.rel (%p214_p2) target bundleno = 490 (0x1ea), region = 44  ;;  %p244_p3 = scmp.lt.s32.totalorder (!%p214_p2), %s631_s11, 3 }
   0xb   : > { %v302_v0 = vld [vmem:[%s1040_s1 + $0x168] sm:$0xff]  ;;  %v299_v1 = vld [vmem:[%s1040_s1 + $0x150] sm:$0xff]  ;;  %v296_v3 = vld [vmem:[%s1040_s1 + $0x138] sm:$0xff]  ;;  %s1047_s11 = smov (!%p244_p3, %s631_s11), 3 }
   0xc   : > { %305 = vmatpush.msra.mxu0 %v302_v0  ;;  %v303_v2 = vld [vmem:[%s1040_s1 + $0x170] sm:$0xff]  ;;  %v300_v4 = vld [vmem:[%s1040_s1 + $0x158] sm:$0xff]  ;;  %v297_v5 = vld [vmem:[%s1040_s1 + $0x140] sm:$0xff]  ;;  %s632_s12 = sshll.u32 %s1047_s11, 3 }
   0xd   : > { %328 = vmatpush.msra.mxu1 %v303_v2  ;;  %v293_v6 = vld [vmem:[%s1040_s1 + $0x120] sm:$0xff]  ;;  %v294_v7 = vld [vmem:[%s1040_s1 + $0x128] sm:$0xff]  ;;  %v291_v9 = vld [vmem:[%s1040_s1 + $0x110] sm:$0xff]  ;;  %s863_s28 = scalar_lea.vmem %s1039_s0, %s632_s12  ;;  %s253_s9 = scalar_lea.vmem %s1045_s6, %s632_s12 }
   0xe   : > { %306 = vmatpush.msra.mxu0 %v299_v1  ;;  %v290_v8 = vld [vmem:[%s1040_s1 + $0x108] sm:$0xff]  ;;  %v287_v10 = vld [vmem:[%s1040_s1 + $0xf0] sm:$0xff]  ;;  %v288_v11 = vld [vmem:[%s1040_s1 + $0xf8] sm:$0xff] }
   0xf   : > { %329 = vmatpush.msra.mxu1 %v300_v4  ;;  %v284_v12 = vld [vmem:[%s1040_s1 + $0xd8] sm:$0xff]  ;;  %v285_v13 = vld [vmem:[%s1040_s1 + $0xe0] sm:$0xff]  ;;  %v402_v15 = vld [vmem:[%s1041_s2 + $0x70] sm:$0xff] }
  0x10   : > { %307 = vmatpush.msra.mxu0 %v296_v3  ;;  %v403_v14 = vld [vmem:[%s1041_s2 + $0x78] sm:$0xff]  ;;  %v281_v16 = vld [vmem:[%s1040_s1 + $0xc0] sm:$0xff]  ;;  %v282_v17 = vld [vmem:[%s1040_s1 + $0xc8] sm:$0xff] }
  0x11   : > { %330 = vmatpush.msra.mxu1 %v297_v5  ;;  %420 = vmatpush.msra.mxu3 %v403_v14  ;;  %v401_v18 = vld [vmem:[%s1041_s2 + $0x68] sm:$0xff]  ;;  %v304_v20 = vld [vmem:[%s1040_s1 + $0x178] sm:$0xff]  ;;  %v279_v21 = vld [vmem:[%s1040_s1 + $0xb0] sm:$0xff] }
  0x12   : > { %308 = vmatpush.msra.mxu0 %v293_v6  ;;  %v278_v19 = vld [vmem:[%s1040_s1 + $0xa8] sm:$0xff]  ;;  %v400_v22 = vld [vmem:[%s1041_s2 + $0x60] sm:$0xff]  ;;  %351 = vmatpush.msra.mxu2 %v304_v20  ;;  %v275_v24 = vld [vmem:[%s1040_s1 + $0x90] sm:$0xff] }
  0x13   : > { %331 = vmatpush.msra.mxu1 %v294_v7  ;;  %421 = vmatpush.msra.mxu3 %v402_v15  ;;  %v301_v23 = vld [vmem:[%s1040_s1 + $0x160] sm:$0xff]  ;;  %v298_v25 = vld [vmem:[%s1040_s1 + $0x148] sm:$0xff]  ;;  %v276_v26 = vld [vmem:[%s1040_s1 + $0x98] sm:$0xff] }
  0x14   : > { %309 = vmatpush.msra.mxu0 %v290_v8  ;;  %v399_v27 = vld [vmem:[%s1041_s2 + $0x58] sm:$0xff]  ;;  %352 = vmatpush.msra.mxu2 %v301_v23  ;;  %v295_v29 = vld [vmem:[%s1040_s1 + $0x130] sm:$0xff]  ;;  %v273_v30 = vld [vmem:[%s1040_s1 + $0x80] sm:$0xff] }
  0x15   : > { %332 = vmatpush.msra.mxu1 %v291_v9  ;;  %422 = vmatpush.msra.mxu3 %v401_v18  ;;  %v272_v28 = vld [vmem:[%s1040_s1 + $0x78] sm:$0xff]  ;;  %v398_v31 = vld [vmem:[%s1041_s2 + $0x50] sm:$0xff]  ;;  %v269_v32 = vld [vmem:[%s1040_s1 + $0x60] sm:$0xff] }
  0x16   : > { %310 = vmatpush.msra.mxu0 %v287_v10  ;;  %353 = vmatpush.msra.mxu2 %v298_v25  ;;  %v292_v33 = vld [vmem:[%s1040_s1 + $0x118] sm:$0xff]  ;;  %v270_v34 = vld [vmem:[%s1040_s1 + $0x68] sm:$0xff]  ;;  %v289_v37 = vld [vmem:[%s1040_s1 + $0x100] sm:$0xff] }
  0x17   : > { %333 = vmatpush.msra.mxu1 %v288_v11  ;;  %423 = vmatpush.msra.mxu3 %v400_v22  ;;  %v397_v35 = vld [vmem:[%s1041_s2 + $0x48] sm:$0xff]  ;;  %v267_v38 = vld [vmem:[%s1040_s1 + $0x50] sm:$0xff]  ;;  %v396_v39 = vld [vmem:[%s1041_s2 + $0x40] sm:$0xff] }
  0x18   : > { %311 = vmatpush.msra.mxu0 %v284_v12  ;;  %354 = vmatpush.msra.mxu2 %v295_v29  ;;  %v266_v36 = vld [vmem:[%s1040_s1 + $0x48] sm:$0xff]  ;;  %v263_v40 = vld [vmem:[%s1040_s1 + $0x30] sm:$0xff]  ;;  %v264_v42 = vld [vmem:[%s1040_s1 + $0x38] sm:$0xff] }
  0x19   : > { %334 = vmatpush.msra.mxu1 %v285_v13  ;;  %424 = vmatpush.msra.mxu3 %v399_v27  ;;  %v286_v41 = vld [vmem:[%s1040_s1 + $0xe8] sm:$0xff]  ;;  %v395_v43 = vld [vmem:[%s1041_s2 + $0x38] sm:$0xff]  ;;  %v283_v45 = vld [vmem:[%s1040_s1 + $0xd0] sm:$0xff] }
  0x1a   : > { %312 = vmatpush.msra.mxu0 %v281_v16  ;;  %355 = vmatpush.msra.mxu2 %v292_v33  ;;  %v260_v44 = vld [vmem:[%s1040_s1 + $0x18] sm:$0xff]  ;;  %v261_v46 = vld [vmem:[%s1040_s1 + $0x20] sm:$0xff]  ;;  %v394_v47 = vld [vmem:[%s1041_s2 + $0x30] sm:$0xff] }
  0x1b   : > { %335 = vmatpush.msra.mxu1 %v282_v17  ;;  %425 = vmatpush.msra.mxu3 %v398_v31  ;;  %v257_v48 = vld [vmem:[%s1040_s1] sm:$0xff]  ;;  %v280_v49 = vld [vmem:[%s1040_s1 + $0xb8] sm:$0xff]  ;;  %v258_v51 = vld [vmem:[%s1040_s1 + $0x8] sm:$0xff] }
  0x1c   : > { %313 = vmatpush.msra.mxu0 %v278_v19  ;;  %356 = vmatpush.msra.mxu2 %v289_v37  ;;  %v881_v50 = vld [vmem:[%s863_s28] sm:$0xff]  ;;  %v393_v52 = vld [vmem:[%s1041_s2 + $0x28] sm:$0xff]  ;;  %v419_v53 = vld [vmem:[%s1041_s2 + $0xf8] sm:$0xff] }
  0x1d   : > { %336 = vmatpush.msra.mxu1 %v279_v21  ;;  %426 = vmatpush.msra.mxu3 %v397_v35  ;;  %v277_v54 = vld [vmem:[%s1040_s1 + $0xa0] sm:$0xff]  ;;  %v418_v56 = vld [vmem:[%s1041_s2 + $0xf0] sm:$0xff]  ;;  %v274_v57 = vld [vmem:[%s1040_s1 + $0x88] sm:$0xff] }
  0x1e   : > { %314 = vmatpush.msra.mxu0 %v275_v24  ;;  %357 = vmatpush.msra.mxu2 %v286_v41  ;;  %v392_v55 = vld [vmem:[%s1041_s2 + $0x20] sm:$0xff]  ;;  %v391_v58 = vld [vmem:[%s1041_s2 + $0x18] sm:$0xff]  ;;  %v417_v59 = vld [vmem:[%s1041_s2 + $0xe8] sm:$0xff] }
  0x1f   : > { %337 = vmatpush.msra.mxu1 %v276_v26  ;;  %427 = vmatpush.msra.mxu3 %v396_v39  ;;  %v271_v60 = vld [vmem:[%s1040_s1 + $0x70] sm:$0xff]  ;;  %v256_v62 = vld [vmem:[%s863_s28 + $0x8] sm:$0xff]  ;;  %v416_v63 = vld [vmem:[%s1041_s2 + $0xe0] sm:$0xff] }
  0x20   : > { %315 = vmatpush.msra.mxu0 %v272_v28  ;;  %358 = vmatpush.msra.mxu2 %v283_v45  ;;  %v390_v61 = vld [vmem:[%s1041_s2 + $0x10] sm:$0xff]  ;;  %v389_v0 = vld [vmem:[%s1041_s2 + $0x8] sm:$0xff]  ;;  %v415_v1 = vld [vmem:[%s1041_s2 + $0xd8] sm:$0xff] }
  0x21   : > { %338 = vmatpush.msra.mxu1 %v273_v30  ;;  %428 = vmatpush.msra.mxu3 %v395_v43  ;;  %v388_v2 = vld [vmem:[%s1041_s2] sm:$0xff]  ;;  %v414_v3 = vld [vmem:[%s1041_s2 + $0xd0] sm:$0xff]  ;;  %v413_v4 = vld [vmem:[%s1041_s2 + $0xc8] sm:$0xff] }
  0x22   : > { %316 = vmatpush.msra.mxu0 %v269_v32  ;;  %359 = vmatpush.msra.mxu2 %v280_v49  ;;  %v412_v5 = vld [vmem:[%s1041_s2 + $0xc0] sm:$0xff]  ;;  %v411_v6 = vld [vmem:[%s1041_s2 + $0xb8] sm:$0xff]  ;;  %v410_v7 = vld [vmem:[%s1041_s2 + $0xb0] sm:$0xff] }
  0x23   : > { %339 = vmatpush.msra.mxu1 %v270_v34  ;;  %429 = vmatpush.msra.mxu3 %v394_v47  ;;  %v268_v8 = vld [vmem:[%s1040_s1 + $0x58] sm:$0xff]  ;;  %v409_v9 = vld [vmem:[%s1041_s2 + $0xa8] sm:$0xff]  ;;  %v265_v10 = vld [vmem:[%s1040_s1 + $0x40] sm:$0xff] }
  0x24   : > { %317 = vmatpush.msra.mxu0 %v266_v36  ;;  %360 = vmatpush.msra.mxu2 %v277_v54  ;;  %v408_v11 = vld [vmem:[%s1041_s2 + $0xa0] sm:$0xff]  ;;  %v262_v12 = vld [vmem:[%s1040_s1 + $0x28] sm:$0xff]  ;;  %v407_v13 = vld [vmem:[%s1041_s2 + $0x98] sm:$0xff] }
  0x25   : > { %340 = vmatpush.msra.mxu1 %v267_v38  ;;  %430 = vmatpush.msra.mxu3 %v393_v52  ;;  %v259_v14 = vld [vmem:[%s1040_s1 + $0x10] sm:$0xff]  ;;  %v405_v16 = vld [vmem:[%s1041_s2 + $0x88] sm:$0xff]  ;;  %v404_v17 = vld [vmem:[%s1041_s2 + $0x80] sm:$0xff] }
  0x26   : > { %318 = vmatpush.msra.mxu0 %v263_v40  ;;  %361 = vmatpush.msra.mxu2 %v274_v57  ;;  %v406_v15 = vld [vmem:[%s1041_s2 + $0x90] sm:$0xff]  ;;  %v497_v18 = vld [vmem:[%s1044_s5 + $0x78] sm:$0xff]  ;;  %v495_v20 = vld [vmem:[%s1044_s5 + $0x68] sm:$0xff] }
  0x27   : > { %341 = vmatpush.msra.mxu1 %v264_v42  ;;  %431 = vmatpush.msra.mxu3 %v392_v55  ;;  %v496_v19 = vld [vmem:[%s1044_s5 + $0x70] sm:$0xff]  ;;  %v494_v21 = vld [vmem:[%s1044_s5 + $0x60] sm:$0xff]  ;;  %v493_v23 = vld [vmem:[%s1044_s5 + $0x58] sm:$0xff] }
  0x28   : > { %319 = vmatpush.msra.mxu0 %v260_v44  ;;  %362 = vmatpush.msra.mxu2 %v271_v60  ;;  %v374_v22 = vld [vmem:[%s1042_s3] sm:$0x3]  ;;  %v492_v25 = vld [vmem:[%s1044_s5 + $0x50] sm:$0xff]  ;;  %v491_v27 = vld [vmem:[%s1044_s5 + $0x48] sm:$0xff] }
  0x29   : > { %342 = vmatpush.msra.mxu1 %v261_v46  ;;  %432 = vmatpush.msra.mxu3 %v391_v58  ;;  %v376_v24 = vperm.slane %v374_v22, 0  ;;  %v377_v26 = vperm.slane %v374_v22, 1  ;;  %v490_v31 = vld [vmem:[%s1044_s5 + $0x40] sm:$0xff]  ;;  %v489_v34 = vld [vmem:[%s1044_s5 + $0x38] sm:$0xff]  ;;  %v488_v42 = vld [vmem:[%s1044_s5 + $0x30] sm:$0xff] }
  0x2a   : > { %320 = vmatpush.msra.mxu0 %v257_v48  ;;  %363 = vmatpush.msra.mxu2 %v268_v8  ;;  %v487_v43 = vld [vmem:[%s1044_s5 + $0x28] sm:$0xff]  ;;  %v486_v44 = vld [vmem:[%s1044_s5 + $0x20] sm:$0xff]  ;;  %v485_v45 = vld [vmem:[%s1044_s5 + $0x18] sm:$0xff] }
  0x2b   : > { %321 = vmatmul.f32.vlgmr.msra.gmra.mxu0 %v881_v50  ;;  %343 = vmatpush.msra.mxu1 %v258_v51  ;;  %v484_v46 = vld [vmem:[%s1044_s5 + $0x10] sm:$0xff]  ;;  %v483_v47 = vld [vmem:[%s1044_s5 + $0x8] sm:$0xff]  ;;  %v482_v48 = vld [vmem:[%s1044_s5] sm:$0xff] }
  0x2c   : > { %344 = vmatmul.f32.vlgmr.msra.gmra.mxu1 %v881_v50  ;;  %443 = vmatpush.msrb.mxu0 %v419_v53 }
  0x2d   : > { %433 = vmatpush.msra.mxu3 %v390_v61  ;;  %364 = vmatpush.msra.mxu2 %v265_v10 }
  0x2e   : > { %444 = vmatpush.msrb.mxu0 %v418_v56  ;;  %498 = vmatpush.msrb.mxu1 %v497_v18 }
  0x2f   : > { %434 = vmatpush.msra.mxu3 %v389_v0  ;;  %365 = vmatpush.msra.mxu2 %v262_v12 }
  0x30   : > { %445 = vmatpush.msrb.mxu0 %v417_v59  ;;  %499 = vmatpush.msrb.mxu1 %v496_v19 }
  0x31   : > { %435 = vmatpush.msra.mxu3 %v388_v2  ;;  %366 = vmatpush.msra.mxu2 %v259_v14 }
  0x32   : > { %446 = vmatpush.msrb.mxu0 %v416_v63  ;;  %367 = vmatmul.f32.vlgmr.msra.gmra.mxu2 %v881_v50 }
  0x33   : > { %324 = vmatmul.f32.gmra.mxu0 %v256_v62  ;;  %637 = vmatpush.msrb.mxu3 %v419_v53  ;;  %v661_v53 = vld [vmem:[%s1043_s4] ss:$0 sm:$0xff] }
  0x34   : > { %347 = vmatmul.f32.gmra.mxu1 %v256_v62  ;;  %447 = vmatpush.msrb.mxu0 %v415_v1 }
  0x35   : > { %638 = vmatpush.msrb.mxu3 %v418_v56  ;;  %521 = vmatpush.msrb.mxu2 %v497_v18 }
  0x36   : > { %448 = vmatpush.msrb.mxu0 %v414_v3  ;;  %500 = vmatpush.msrb.mxu1 %v495_v20 }
  0x37   : > { %639 = vmatpush.msrb.mxu3 %v417_v59  ;;  %522 = vmatpush.msrb.mxu2 %v496_v19 }
  0x38   : > { %449 = vmatpush.msrb.mxu0 %v413_v4  ;;  %501 = vmatpush.msrb.mxu1 %v494_v21 }
  0x39   : > { %640 = vmatpush.msrb.mxu3 %v416_v63  ;;  %523 = vmatpush.msrb.mxu2 %v495_v20 }
  0x3a   : > { %450 = vmatpush.msrb.mxu0 %v412_v5  ;;  %370 = vmatmul.f32.gmra.mxu2 %v256_v62 }
  0x3b   : > { %641 = vmatpush.msrb.mxu3 %v415_v1  ;;  %524 = vmatpush.msrb.mxu2 %v494_v21 }
  0x3c   : > { %451 = vmatpush.msrb.mxu0 %v411_v6  ;;  %502 = vmatpush.msrb.mxu1 %v493_v23 }
  0x3d   : > { %642 = vmatpush.msrb.mxu3 %v414_v3  ;;  %525 = vmatpush.msrb.mxu2 %v493_v23 }
  0x3e   : > { %452 = vmatpush.msrb.mxu0 %v410_v7  ;;  %503 = vmatpush.msrb.mxu1 %v492_v25 }
  0x3f   : > { %643 = vmatpush.msrb.mxu3 %v413_v4  ;;  %526 = vmatpush.msrb.mxu2 %v492_v25 }
  0x40   : > { %453 = vmatpush.msrb.mxu0 %v409_v9  ;;  %504 = vmatpush.msrb.mxu1 %v491_v27 }
  0x41   : > { %644 = vmatpush.msrb.mxu3 %v412_v5  ;;  %527 = vmatpush.msrb.mxu2 %v491_v27 }
  0x42   : > { %454 = vmatpush.msrb.mxu0 %v408_v11  ;;  %505 = vmatpush.msrb.mxu1 %v490_v31 }
  0x43   : > { %645 = vmatpush.msrb.mxu3 %v411_v6  ;;  %528 = vmatpush.msrb.mxu2 %v490_v31 }
  0x44   : > { %455 = vmatpush.msrb.mxu0 %v407_v13  ;;  %506 = vmatpush.msrb.mxu1 %v489_v34 }
  0x45   : > { %646 = vmatpush.msrb.mxu3 %v410_v7  ;;  %529 = vmatpush.msrb.mxu2 %v489_v34 }
  0x46   : > { %456 = vmatpush.msrb.mxu0 %v406_v15  ;;  %507 = vmatpush.msrb.mxu1 %v488_v42 }
  0x47   : > { %647 = vmatpush.msrb.mxu3 %v409_v9  ;;  %530 = vmatpush.msrb.mxu2 %v488_v42 }
  0x48   : > { %457 = vmatpush.msrb.mxu0 %v405_v16  ;;  %508 = vmatpush.msrb.mxu1 %v487_v43 }
  0x49   : > { %648 = vmatpush.msrb.mxu3 %v408_v11  ;;  %531 = vmatpush.msrb.mxu2 %v487_v43 }
  0x4a   : > { %458 = vmatpush.msrb.mxu0 %v404_v17  ;;  %509 = vmatpush.msrb.mxu1 %v486_v44 }
  0x4b   : > { %649 = vmatpush.msrb.mxu3 %v407_v13  ;;  %532 = vmatpush.msrb.mxu2 %v486_v44 }
  0x4c   : > { %510 = vmatpush.msrb.mxu1 %v485_v45 }
  0x4d   : > { %650 = vmatpush.msrb.mxu3 %v406_v15  ;;  %533 = vmatpush.msrb.mxu2 %v485_v45 }
  0x4e   : > { %511 = vmatpush.msrb.mxu1 %v484_v46 }
  0x4f   : > { %651 = vmatpush.msrb.mxu3 %v405_v16  ;;  %534 = vmatpush.msrb.mxu2 %v484_v46 }
  0x50   : > { %512 = vmatpush.msrb.mxu1 %v483_v47 }
  0x51   : > { %652 = vmatpush.msrb.mxu3 %v404_v17  ;;  %535 = vmatpush.msrb.mxu2 %v483_v47 }
  0x52   : > { %513 = vmatpush.msrb.mxu1 %v482_v48 }
  0x53   : > { %536 = vmatpush.msrb.mxu2 %v482_v48 }
  0xa8   : > { %v322_v28 = vpop.f32.mrf.mxu0 }
  0xa9   : > { %v380_v29 = vadd.f32 %v376_v24, %v322_v28  ;;  %v345_v30 = vpop.f32.mrf.mxu1 }
  0xaa   : > { %v381_v32 = vadd.f32 %v377_v26, %v345_v30 }
  0xab   : > { %v384_v33 = vmax.f32 %v380_v29, 0.0 }
  0xac   : > { %v385_v35 = vmax.f32 %v381_v32, 0.0 }
  0xad   : > { %436 = vmatmul.f32.vlgmr.msra.gmra.mxu3 %v384_v33 }
  0xae   : > { %459 = vmatmul.f32.vlgmr.msrb.gmra.mxu0 %v385_v35 }
  0xb0   : > { %v325_v36 = vpop.f32.mrf.mxu0 }
  0xb1   : > { %v382_v37 = vadd.f32 %v376_v24, %v325_v36  ;;  %v348_v38 = vpop.f32.mrf.mxu1 }
  0xb2   : > { %v383_v40 = vadd.f32 %v377_v26, %v348_v38 }
  0xb3   : > { %v386_v39 = vmax.f32 %v382_v37, 0.0 }
  0xb4   : > { %v387_v41 = vmax.f32 %v383_v40, 0.0 }
  0xb5   : > { %439 = vmatmul.f32.gmra.mxu3 %v386_v39  ;;  %v368_v51 = vpop.f32.mrf.mxu2 }
  0xbd   : > { %462 = vmatmul.f32.vlgmr.msrb.gmra.mxu3 %v387_v41  ;;  %v371_v62 = vpop.f32.mrf.mxu2 }
 0x12b   : > { %v460_v49 = vpop.f32.mrf.mxu0 }
 0x130   : > { %v437_v50 = vpop.f32.mrf.mxu3 }
 0x131   : > { %v461_v52 = vadd.f32 %v460_v49, %v437_v50 }
 0x133   : > { %v466_v54 = vadd.f32 %v461_v52, %v368_v51 }
 0x135   : > { %v472_v55 = vadd.f32 %v661_v53, %v466_v54 }
 0x137   : > { %v474_v56 = vmul.f32 %v472_v55, %v472_v55 }
 0x138   : > { %v440_v57 = vpop.f32.mrf.mxu3 }
 0x139   : > { %v476_v58 = vpack.c.bf16 %v474_v56, %v474_v56 }
 0x13b   : > { %v478_v59 = vunpack.c.l.bf16 %v476_v58 }
 0x13d   : > { %537 = vmatmul.f32.vlgmr.msrb.gmra.mxu2 %v478_v59  ;;  %v480_v60 = vsub.f32 %v474_v56, %v478_v59 }
 0x13f   : > { %514 = vmatmul.f32.vlgmr.msrb.gmra.mxu1 %v480_v60 }
 0x140   : > { %v463_v61 = vpop.f32.mrf.mxu3 }
 0x141   : > { %v464_v63 = vadd.f32 %v463_v61, %v440_v57 }
 0x143   : > { %v467_v0 = vadd.f32 %v464_v63, %v371_v62 }
 0x145   : > { %v473_v1 = vadd.f32 %v661_v53, %v467_v0 }
 0x147   : > { %v475_v2 = vmul.f32 %v473_v1, %v473_v1 }
 0x149   : > { %v477_v3 = vpack.c.bf16 %v475_v2, %v475_v2 }
 0x14b   : > { %v479_v4 = vunpack.c.l.bf16 %v477_v3 }
 0x14d   : > { %540 = vmatmul.f32.gmra.mxu2 %v479_v4  ;;  %v481_v5 = vsub.f32 %v475_v2, %v479_v4 }
 0x14f   : > { %517 = vmatmul.f32.gmra.mxu1 %v481_v5 }
 0x1bc   : > { %v515_v6 = vpop.f32.mrf.mxu1 }
 0x1c0   : > { %v538_v7 = vpop.f32.mrf.mxu2 }
 0x1c1   : > { %v539_v8 = vadd.f32 %v538_v7, %v515_v6 }
 0x1c3   : > { %v544_v9 = vmax.f32 %v539_v8, 1e-24 }
 0x1c5   : > { %662 = vrsqrt.f32 %v544_v9  ;;  %vm552_vm1 = vweird.f32 %v544_v9 }
 0x1cb   : > { %v663_v10 = vpop.eup %662 }
 0x1cc   : > { %v547_v11 = vmul.f32 %v663_v10, %v544_v9  ;;  %v518_v14 = vpop.f32.mrf.mxu1  ;;  %vm553_vm0 = vweird.f32 %v663_v10 }
 0x1cd   : > { %vm554_vm2 = vmor %vm552_vm1, %vm553_vm0 }
 0x1ce   : > { %v548_v12 = vmul.f32 %v663_v10, %v547_v11 }
 0x1d0   : > { %v549_v13 = vmul.f32 0.5, %v548_v12  ;;  %v541_v15 = vpop.f32.mrf.mxu2 }
 0x1d1   : > { %v542_v16 = vadd.f32 %v541_v15, %v518_v14 }
 0x1d2   : > { %v550_v17 = vsub.f32 1.5, %v549_v13 }
 0x1d3   : > { %v545_v18 = vmax.f32 %v542_v16, 1e-24 }
 0x1d4   : > { %v551_v19 = vmul.f32 %v663_v10, %v550_v17 }
 0x1d5   : > { %664 = vrsqrt.f32 %v545_v18  ;;  %vm562_vm4 = vweird.f32 %v545_v18 }
 0x1d6   : > { %v555_v20 = vsel %vm554_vm2, %v663_v10, %v551_v19 }
 0x1d7   : > { %v566_v21 = vmul.f32 %v555_v20, %v472_v55 }
 0x1d9   : > { %568 = vst [vmem:[%s253_s9] sm:$0xff] %v566_v21 }
 0x1db   : > { %v665_v22 = vpop.eup %664 }
 0x1dc   : > { %v557_v23 = vmul.f32 %v665_v22, %v545_v18  ;;  %vm563_vm3 = vweird.f32 %v665_v22 }
 0x1dd   : > { %vm564_vm5 = vmor %vm562_vm4, %vm563_vm3 }
 0x1de   : > { %v558_v24 = vmul.f32 %v665_v22, %v557_v23 }
 0x1e0   : > { %v559_v25 = vmul.f32 0.5, %v558_v24 }
 0x1e2   : > { %v560_v26 = vsub.f32 1.5, %v559_v25 }
 0x1e4   : > { %v561_v27 = vmul.f32 %v665_v22, %v560_v26 }
 0x1e6   : > { %v565_v28 = vsel %vm564_vm5, %v665_v22, %v561_v27 }
 0x1e7   : > { %v567_v29 = vmul.f32 %v565_v28, %v473_v1 }
 0x1e9   : > { %569 = vst [vmem:[%s253_s9 + $0x8] sm:$0xff] %v567_v29 }
 0x1ea PF: > { %s16_s21 = sadd.s32 1, %s672_s21  }
 0x1eb   : > { %p13_p4 = scmp.ge.s32.totalorder %s16_s21, 4  }
 0x1ed   :  { %15 = sbr.rel (!%p13_p4) target bundleno = 1 (0x1), region = 74 }

// kernel: mlp_forward.3
= control target key start
LH: loop header
LB: loop body
LE: loop exit
PB: predicated region body
PF: predicated region fallthrough
CT: control target
= control target key end

     0   :  { %s640_s1 = inlined_call_operand.vmem [shape: f32[128,384], index: 1, kind: input, shape index: {}]   ;;  %s641_s2 = inlined_call_operand.vmem [shape: f32[256,128], index: 2, kind: input, shape index: {}]   ;;  %s642_s0 = inlined_call_operand.vmem [shape: f32[5,128], index: 0, kind: input, shape index: {}]   ;;  %s643_s5 = inlined_call_operand.vmem [shape: f32[128,128], index: 5, kind: input, shape index: {}]   ;;  %s644_s3 = inlined_call_operand.vmem [shape: f32[1,256], index: 3, kind: input, shape index: {}]   ;;  %s645_s4 = inlined_call_operand.vmem [shape: f32[1,128], index: 4, kind: input, shape index: {}]   ;;  %s646_s6 = inlined_call_operand.vmem [shape: f32[5,128], index: 6, kind: output, shape index: {}]  }
   0x1   :  { %v69_v0 = vld [vmem:[%s640_s1 + $0x168] sm:$0xff]  ;;  %v66_v1 = vld [vmem:[%s640_s1 + $0x150] sm:$0xff]  ;;  %v63_v3 = vld [vmem:[%s640_s1 + $0x138] sm:$0xff] }
   0x2   :  { %72 = vmatpush.msra.mxu0 %v69_v0  ;;  %v70_v2 = vld [vmem:[%s640_s1 + $0x170] sm:$0xff]  ;;  %v67_v4 = vld [vmem:[%s640_s1 + $0x158] sm:$0xff]  ;;  %v64_v5 = vld [vmem:[%s640_s1 + $0x140] sm:$0xff] }
   0x3   :  { %92 = vmatpush.msra.mxu1 %v70_v2  ;;  %v60_v6 = vld [vmem:[%s640_s1 + $0x120] sm:$0xff]  ;;  %v61_v7 = vld [vmem:[%s640_s1 + $0x128] sm:$0xff]  ;;  %v58_v9 = vld [vmem:[%s640_s1 + $0x110] sm:$0xff] }
   0x4   :  { %73 = vmatpush.msra.mxu0 %v66_v1  ;;  %v57_v8 = vld [vmem:[%s640_s1 + $0x108] sm:$0xff]  ;;  %v54_v10 = vld [vmem:[%s640_s1 + $0xf0] sm:$0xff]  ;;  %v55_v11 = vld [vmem:[%s640_s1 + $0xf8] sm:$0xff] }
   0x5   :  { %93 = vmatpush.msra.mxu1 %v67_v4  ;;  %v51_v12 = vld [vmem:[%s640_s1 + $0xd8] sm:$0xff]  ;;  %v52_v13 = vld [vmem:[%s640_s1 + $0xe0] sm:$0xff]  ;;  %v156_v16 = vld [vmem:[%s641_s2 + $0x70] sm:$0xff] }
   0x6   :  { %74 = vmatpush.msra.mxu0 %v63_v3  ;;  %v157_v14 = vld [vmem:[%s641_s2 + $0x78] sm:$0xff]  ;;  %v48_v17 = vld [vmem:[%s640_s1 + $0xc0] sm:$0xff]  ;;  %v49_v19 = vld [vmem:[%s640_s1 + $0xc8] sm:$0xff] }
   0x7   :  { %94 = vmatpush.msra.mxu1 %v64_v5  ;;  %v71_v15 = vld [vmem:[%s640_s1 + $0x178] sm:$0xff]  ;;  %174 = vmatpush.msra.mxu3 %v157_v14  ;;  %v68_v18 = vld [vmem:[%s640_s1 + $0x160] sm:$0xff]  ;;  %v155_v20 = vld [vmem:[%s641_s2 + $0x68] sm:$0xff] }
   0x8   :  { %75 = vmatpush.msra.mxu0 %v60_v6  ;;  %112 = vmatpush.msra.mxu2 %v71_v15  ;;  %v45_v21 = vld [vmem:[%s640_s1 + $0xa8] sm:$0xff]  ;;  %v46_v23 = vld [vmem:[%s640_s1 + $0xb0] sm:$0xff]  ;;  %v154_v24 = vld [vmem:[%s641_s2 + $0x60] sm:$0xff] }
   0x9   :  { %95 = vmatpush.msra.mxu1 %v61_v7  ;;  %175 = vmatpush.msra.mxu3 %v156_v16  ;;  %v65_v22 = vld [vmem:[%s640_s1 + $0x148] sm:$0xff]  ;;  %v42_v25 = vld [vmem:[%s640_s1 + $0x90] sm:$0xff]  ;;  %v43_v27 = vld [vmem:[%s640_s1 + $0x98] sm:$0xff] }
   0xa   :  { %76 = vmatpush.msra.mxu0 %v57_v8  ;;  %113 = vmatpush.msra.mxu2 %v68_v18  ;;  %v62_v26 = vld [vmem:[%s640_s1 + $0x130] sm:$0xff]  ;;  %v153_v28 = vld [vmem:[%s641_s2 + $0x58] sm:$0xff]  ;;  %v40_v31 = vld [vmem:[%s640_s1 + $0x80] sm:$0xff] }
   0xb   :  { %96 = vmatpush.msra.mxu1 %v58_v9  ;;  %176 = vmatpush.msra.mxu3 %v155_v20  ;;  %v39_v29 = vld [vmem:[%s640_s1 + $0x78] sm:$0xff]  ;;  %v152_v32 = vld [vmem:[%s641_s2 + $0x50] sm:$0xff]  ;;  %v36_v33 = vld [vmem:[%s640_s1 + $0x60] sm:$0xff] }
   0xc   :  { %77 = vmatpush.msra.mxu0 %v54_v10  ;;  %114 = vmatpush.msra.mxu2 %v65_v22  ;;  %v59_v30 = vld [vmem:[%s640_s1 + $0x118] sm:$0xff]  ;;  %v56_v34 = vld [vmem:[%s640_s1 + $0x100] sm:$0xff]  ;;  %v37_v35 = vld [vmem:[%s640_s1 + $0x68] sm:$0xff] }
   0xd   :  { %97 = vmatpush.msra.mxu1 %v55_v11  ;;  %177 = vmatpush.msra.mxu3 %v154_v24  ;;  %v151_v36 = vld [vmem:[%s641_s2 + $0x48] sm:$0xff]  ;;  %v34_v39 = vld [vmem:[%s640_s1 + $0x50] sm:$0xff]  ;;  %v150_v40 = vld [vmem:[%s641_s2 + $0x40] sm:$0xff] }
   0xe   :  { %78 = vmatpush.msra.mxu0 %v51_v12  ;;  %115 = vmatpush.msra.mxu2 %v62_v26  ;;  %v33_v37 = vld [vmem:[%s640_s1 + $0x48] sm:$0xff]  ;;  %v30_v41 = vld [vmem:[%s640_s1 + $0x30] sm:$0xff]  ;;  %v31_v43 = vld [vmem:[%s640_s1 + $0x38] sm:$0xff] }
   0xf   :  { %98 = vmatpush.msra.mxu1 %v52_v13  ;;  %178 = vmatpush.msra.mxu3 %v153_v28  ;;  %v53_v38 = vld [vmem:[%s640_s1 + $0xe8] sm:$0xff]  ;;  %v50_v42 = vld [vmem:[%s640_s1 + $0xd0] sm:$0xff]  ;;  %v149_v44 = vld [vmem:[%s641_s2 + $0x38] sm:$0xff] }
  0x10   :  { %79 = vmatpush.msra.mxu0 %v48_v17  ;;  %116 = vmatpush.msra.mxu2 %v59_v30  ;;  %v27_v45 = vld [vmem:[%s640_s1 + $0x18] sm:$0xff]  ;;  %v28_v47 = vld [vmem:[%s640_s1 + $0x20] sm:$0xff]  ;;  %v148_v48 = vld [vmem:[%s641_s2 + $0x30] sm:$0xff] }
  0x11   :  { %99 = vmatpush.msra.mxu1 %v49_v19  ;;  %179 = vmatpush.msra.mxu3 %v152_v32  ;;  %v47_v46 = vld [vmem:[%s640_s1 + $0xb8] sm:$0xff]  ;;  %v24_v49 = vld [vmem:[%s640_s1] sm:$0xff]  ;;  %v25_v52 = vld [vmem:[%s640_s1 + $0x8] sm:$0xff] }
  0x12   :  { %80 = vmatpush.msra.mxu0 %v45_v21  ;;  %117 = vmatpush.msra.mxu2 %v56_v34  ;;  %v44_v50 = vld [vmem:[%s640_s1 + $0xa0] sm:$0xff]  ;;  %v173_v53 = vld [vmem:[%s641_s2 + $0xf8] sm:$0xff]  ;;  %v147_v54 = vld [vmem:[%s641_s2 + $0x28] sm:$0xff] }
  0x13   :  { %100 = vmatpush.msra.mxu1 %v46_v23  ;;  %180 = vmatpush.msra.mxu3 %v151_v36  ;;  %v491_v51 = vld [vmem:[%s642_s0] sm:$0x1f]  ;;  %v41_v55 = vld [vmem:[%s640_s1 + $0x88] sm:$0xff]  ;;  %v172_v56 = vld [vmem:[%s641_s2 + $0xf0] sm:$0xff] }
  0x14   :  { %81 = vmatpush.msra.mxu0 %v42_v25  ;;  %118 = vmatpush.msra.mxu2 %v53_v38  ;;  %v146_v57 = vld [vmem:[%s641_s2 + $0x20] sm:$0xff]  ;;  %v38_v58 = vld [vmem:[%s640_s1 + $0x70] sm:$0xff]  ;;  %v171_v59 = vld [vmem:[%s641_s2 + $0xe8] sm:$0xff] }
  0x15   :  { %101 = vmatpush.msra.mxu1 %v43_v27  ;;  %181 = vmatpush.msra.mxu3 %v150_v40  ;;  %v145_v60 = vld [vmem:[%s641_s2 + $0x18] sm:$0xff]  ;;  %v170_v61 = vld [vmem:[%s641_s2 + $0xe0] sm:$0xff]  ;;  %v168_v63 = vld [vmem:[%s641_s2 + $0xd0] sm:$0xff] }
  0x16   :  { %82 = vmatpush.msra.mxu0 %v39_v29  ;;  %119 = vmatpush.msra.mxu2 %v50_v42  ;;  %v169_v62 = vld [vmem:[%s641_s2 + $0xd8] sm:$0xff]  ;;  %v167_v0 = vld [vmem:[%s641_s2 + $0xc8] sm:$0xff]  ;;  %v166_v1 = vld [vmem:[%s641_s2 + $0xc0] sm:$0xff] }
  0x17   :  { %102 = vmatpush.msra.mxu1 %v40_v31  ;;  %182 = vmatpush.msra.mxu3 %v149_v44  ;;  %v165_v2 = vld [vmem:[%s641_s2 + $0xb8] sm:$0xff]  ;;  %v164_v3 = vld [vmem:[%s641_s2 + $0xb0] sm:$0xff]  ;;  %v163_v6 = vld [vmem:[%s641_s2 + $0xa8] sm:$0xff] }
  0x18   :  { %83 = vmatpush.msra.mxu0 %v36_v33  ;;  %120 = vmatpush.msra.mxu2 %v47_v46  ;;  %v35_v4 = vld [vmem:[%s640_s1 + $0x58] sm:$0xff]  ;;  %v144_v5 = vld [vmem:[%s641_s2 + $0x10] sm:$0xff]  ;;  %v32_v7 = vld [vmem:[%s640_s1 + $0x40] sm:$0xff] }
  0x19   :  { %103 = vmatpush.msra.mxu1 %v37_v35  ;;  %183 = vmatpush.msra.mxu3 %v148_v48  ;;  %v143_v8 = vld [vmem:[%s641_s2 + $0x8] sm:$0xff]  ;;  %v162_v9 = vld [vmem:[%s641_s2 + $0xa0] sm:$0xff]  ;;  %v161_v12 = vld [vmem:[%s641_s2 + $0x98] sm:$0xff] }
  0x1a   :  { %84 = vmatpush.msra.mxu0 %v33_v37  ;;  %121 = vmatpush.msra.mxu2 %v44_v50  ;;  %v29_v10 = vld [vmem:[%s640_s1 + $0x28] sm:$0xff]  ;;  %v142_v11 = vld [vmem:[%s641_s2] sm:$0xff]  ;;  %v26_v13 = vld [vmem:[%s640_s1 + $0x10] sm:$0xff] }
  0x1b   :  { %104 = vmatpush.msra.mxu1 %v34_v39  ;;  %184 = vmatpush.msra.mxu3 %v147_v54  ;;  %v160_v14 = vld [vmem:[%s641_s2 + $0x90] sm:$0xff]  ;;  %v159_v15 = vld [vmem:[%s641_s2 + $0x88] sm:$0xff]  ;;  %v239_v16 = vld [vmem:[%s643_s5 + $0x78] sm:$0xff] }
  0x1c   :  { %85 = vmatpush.msra.mxu0 %v30_v41  ;;  %122 = vmatpush.msra.mxu2 %v41_v55  ;;  %v238_v17 = vld [vmem:[%s643_s5 + $0x70] sm:$0xff]  ;;  %v158_v18 = vld [vmem:[%s641_s2 + $0x80] sm:$0xff]  ;;  %v237_v19 = vld [vmem:[%s643_s5 + $0x68] sm:$0xff] }
  0x1d   :  { %105 = vmatpush.msra.mxu1 %v31_v43  ;;  %185 = vmatpush.msra.mxu3 %v146_v57  ;;  %v236_v20 = vld [vmem:[%s643_s5 + $0x60] sm:$0xff]  ;;  %v235_v21 = vld [vmem:[%s643_s5 + $0x58] sm:$0xff]  ;;  %v234_v22 = vld [vmem:[%s643_s5 + $0x50] sm:$0xff] }
  0x1e   :  { %86 = vmatpush.msra.mxu0 %v27_v45  ;;  %123 = vmatpush.msra.mxu2 %v38_v58  ;;  %v233_v23 = vld [vmem:[%s643_s5 + $0x48] sm:$0xff]  ;;  %v232_v24 = vld [vmem:[%s643_s5 + $0x40] sm:$0xff]  ;;  %v231_v25 = vld [vmem:[%s643_s5 + $0x38] sm:$0xff] }
  0x1f   :  { %106 = vmatpush.msra.mxu1 %v28_v47  ;;  %186 = vmatpush.msra.mxu3 %v145_v60  ;;  %v132_v26 = vld [vmem:[%s644_s3] sm:$0x3]  ;;  %v230_v35 = vld [vmem:[%s643_s5 + $0x30] sm:$0xff]  ;;  %v229_v36 = vld [vmem:[%s643_s5 + $0x28] sm:$0xff] }
  0x20   :  { %87 = vmatpush.msra.mxu0 %v24_v49  ;;  %124 = vmatpush.msra.mxu2 %v35_v4  ;;  %v134_v27 = vperm.slane %v132_v26, 0  ;;  %v135_v28 = vperm.slane %v132_v26, 1  ;;  %v228_v37 = vld [vmem:[%s643_s5 + $0x20] sm:$0xff]  ;;  %v227_v38 = vld [vmem:[%s643_s5 + $0x18] sm:$0xff]  ;;  %v226_v39 = vld [vmem:[%s643_s5 + $0x10] sm:$0xff] }
  0x21   :  { %88 = vmatmul.f32.vlgmr.msra.gmra.mxu0 %v491_v51  ;;  %107 = vmatpush.msra.mxu1 %v25_v52  ;;  %v225_v40 = vld [vmem:[%s643_s5 + $0x8] sm:$0xff]  ;;  %v224_v41 = vld [vmem:[%s643_s5] sm:$0xff] }
  0x22   :  { %108 = vmatmul.f32.vlgmr.msra.gmra.mxu1 %v491_v51  ;;  %194 = vmatpush.msrb.mxu0 %v173_v53  ;;  %v297_v46 = vld [vmem:[%s645_s4] ss:$0 sm:$0xff] }
  0x23   :  { %187 = vmatpush.msra.mxu3 %v144_v5  ;;  %125 = vmatpush.msra.mxu2 %v32_v7 }
  0x24   :  { %195 = vmatpush.msrb.mxu0 %v172_v56  ;;  %240 = vmatpush.msrb.mxu1 %v239_v16 }
  0x25   :  { %188 = vmatpush.msra.mxu3 %v143_v8  ;;  %126 = vmatpush.msra.mxu2 %v29_v10 }
  0x26   :  { %196 = vmatpush.msrb.mxu0 %v171_v59  ;;  %241 = vmatpush.msrb.mxu1 %v238_v17 }
  0x27   :  { %189 = vmatpush.msra.mxu3 %v142_v11  ;;  %127 = vmatpush.msra.mxu2 %v26_v13 }
  0x28   :  { %197 = vmatpush.msrb.mxu0 %v170_v61  ;;  %128 = vmatmul.f32.vlgmr.msra.gmra.mxu2 %v491_v51 }
  0x29   :  { %260 = vmatpush.msrb.mxu2 %v239_v16  ;;  %242 = vmatpush.msrb.mxu1 %v237_v19 }
  0x2a   :  { %198 = vmatpush.msrb.mxu0 %v169_v62 }
  0x2b   :  { %261 = vmatpush.msrb.mxu2 %v238_v17  ;;  %243 = vmatpush.msrb.mxu1 %v236_v20 }
  0x2c   :  { %199 = vmatpush.msrb.mxu0 %v168_v63 }
  0x2d   :  { %262 = vmatpush.msrb.mxu2 %v237_v19  ;;  %244 = vmatpush.msrb.mxu1 %v235_v21 }
  0x2e   :  { %200 = vmatpush.msrb.mxu0 %v167_v0 }
  0x2f   :  { %263 = vmatpush.msrb.mxu2 %v236_v20  ;;  %245 = vmatpush.msrb.mxu1 %v234_v22 }
  0x30   :  { %201 = vmatpush.msrb.mxu0 %v166_v1 }
  0x31   :  { %264 = vmatpush.msrb.mxu2 %v235_v21  ;;  %246 = vmatpush.msrb.mxu1 %v233_v23 }
  0x32   :  { %202 = vmatpush.msrb.mxu0 %v165_v2 }
  0x33   :  { %265 = vmatpush.msrb.mxu2 %v234_v22  ;;  %247 = vmatpush.msrb.mxu1 %v232_v24 }
  0x34   :  { %203 = vmatpush.msrb.mxu0 %v164_v3 }
  0x35   :  { %266 = vmatpush.msrb.mxu2 %v233_v23  ;;  %248 = vmatpush.msrb.mxu1 %v231_v25 }
  0x36   :  { %204 = vmatpush.msrb.mxu0 %v163_v6 }
  0x37   :  { %267 = vmatpush.msrb.mxu2 %v232_v24  ;;  %249 = vmatpush.msrb.mxu1 %v230_v35 }
  0x38   :  { %205 = vmatpush.msrb.mxu0 %v162_v9 }
  0x39   :  { %268 = vmatpush.msrb.mxu2 %v231_v25  ;;  %250 = vmatpush.msrb.mxu1 %v229_v36 }
  0x3a   :  { %206 = vmatpush.msrb.mxu0 %v161_v12 }
  0x3b   :  { %269 = vmatpush.msrb.mxu2 %v230_v35  ;;  %251 = vmatpush.msrb.mxu1 %v228_v37 }
  0x3c   :  { %207 = vmatpush.msrb.mxu0 %v160_v14 }
  0x3d   :  { %270 = vmatpush.msrb.mxu2 %v229_v36  ;;  %252 = vmatpush.msrb.mxu1 %v227_v38 }
  0x3e   :  { %208 = vmatpush.msrb.mxu0 %v159_v15 }
  0x3f   :  { %271 = vmatpush.msrb.mxu2 %v228_v37  ;;  %253 = vmatpush.msrb.mxu1 %v226_v39 }
  0x40   :  { %209 = vmatpush.msrb.mxu0 %v158_v18 }
  0x41   :  { %272 = vmatpush.msrb.mxu2 %v227_v38  ;;  %254 = vmatpush.msrb.mxu1 %v225_v40 }
  0x43   :  { %273 = vmatpush.msrb.mxu2 %v226_v39  ;;  %255 = vmatpush.msrb.mxu1 %v224_v41 }
  0x45   :  { %274 = vmatpush.msrb.mxu2 %v225_v40 }
  0x47   :  { %275 = vmatpush.msrb.mxu2 %v224_v41 }
  0x9e   :  { %v89_v29 = vpop.f32.mrf.mxu0 }
  0x9f   :  { %v138_v30 = vadd.f32 %v134_v27, %v89_v29  ;;  %v109_v31 = vpop.f32.mrf.mxu1 }
  0xa0   :  { %v139_v32 = vadd.f32 %v135_v28, %v109_v31 }
  0xa1   :  { %v140_v33 = vmax.f32 %v138_v30, 0.0 }
  0xa2   :  { %v141_v34 = vmax.f32 %v139_v32, 0.0 }
  0xa3   :  { %190 = vmatmul.f32.vlgmr.msra.gmra.mxu3 %v140_v33 }
  0xa4   :  { %210 = vmatmul.f32.vlgmr.msrb.gmra.mxu0 %v141_v34 }
  0xab   :  { %v129_v44 = vpop.f32.mrf.mxu2 }
 0x121   :  { %v211_v42 = vpop.f32.mrf.mxu0 }
 0x126   :  { %v191_v43 = vpop.f32.mrf.mxu3 }
 0x127   :  { %v212_v45 = vadd.f32 %v211_v42, %v191_v43 }
 0x129   :  { %v214_v47 = vadd.f32 %v212_v45, %v129_v44 }
 0x12b   :  { %v219_v48 = vadd.f32 %v297_v46, %v214_v47 }
 0x12d   :  { %v220_v49 = vmul.f32 %v219_v48, %v219_v48 }
 0x12f   :  { %v221_v50 = vpack.c.bf16 %v220_v49, %v220_v49 }
 0x131   :  { %v222_v51 = vunpack.c.l.bf16 %v221_v50 }
 0x133   :  { %276 = vmatmul.f32.vlgmr.msrb.gmra.mxu2 %v222_v51  ;;  %v223_v52 = vsub.f32 %v220_v49, %v222_v51 }
 0x135   :  { %256 = vmatmul.f32.vlgmr.msrb.gmra.mxu1 %v223_v52 }
 0x1b2   :  { %v257_v53 = vpop.f32.mrf.mxu1 }
 0x1b6   :  { %v277_v54 = vpop.f32.mrf.mxu2 }
 0x1b7   :  { %v278_v55 = vadd.f32 %v277_v54, %v257_v53 }
 0x1b9   :  { %v280_v56 = vmax.f32 %v278_v55, 1e-24 }
 0x1bb   :  { %298 = vrsqrt.f32 %v280_v56  ;;  %vm287_vm1 = vweird.f32 %v280_v56 }
 0x1c1   :  { %v299_v57 = vpop.eup %298 }
 0x1c2   :  { %v282_v58 = vmul.f32 %v299_v57, %v280_v56  ;;  %vm288_vm0 = vweird.f32 %v299_v57 }
 0x1c3   :  { %vm289_vm2 = vmor %vm287_vm1, %vm288_vm0 }
 0x1c4   :  { %v283_v59 = vmul.f32 %v299_v57, %v282_v58 }
 0x1c6   :  { %v284_v60 = vmul.f32 0.5, %v283_v59 }
 0x1c8   :  { %v285_v61 = vsub.f32 1.5, %v284_v60 }
 0x1ca   :  { %v286_v62 = vmul.f32 %v299_v57, %v285_v61 }
 0x1cc   :  { %v290_v63 = vsel %vm289_vm2, %v299_v57, %v286_v62 }
 0x1cd   :  { %v291_v0 = vmul.f32 %v290_v63, %v219_v48 }
 0x1cf   :  { %292 = vst [vmem:[%s646_s6] sm:$0x1f] %v291_v0 }

</bundles_post_ra>
